<compile_context>
chip_gen: v7x
topology: tpu7x:2x2x1
jax: 0.10.0
libtpu: 0.0.40
codegen_flags: <defaults>
</compile_context>

<pallas_src>
import functools
import math

import jax
import jax.numpy as jnp
from jax.experimental import pallas as pl
from jax.experimental.pallas import tpu as pltpu


def _rup(x, m):
    return ((x + m - 1) // m) * m


# ----------------------------------------------------------------------------
# Pallas GEMM kernels: fused bias + optional ReLU (+ optional residual add)
# ----------------------------------------------------------------------------
def _gemm_k1_kernel(x_ref, w_ref, b_ref, o_ref, *, relu):
    acc = jnp.dot(x_ref[...], w_ref[...], preferred_element_type=jnp.float32)
    out = acc + b_ref[...]
    if relu:
        out = jnp.maximum(out, 0.0)
    o_ref[...] = out.astype(o_ref.dtype)


def _gemm_k1_res_kernel(x_ref, w_ref, b_ref, r_ref, o_ref):
    acc = jnp.dot(x_ref[...], w_ref[...], preferred_element_type=jnp.float32)
    out = acc + b_ref[...] + r_ref[...].astype(jnp.float32)
    o_ref[...] = jnp.maximum(out, 0.0).astype(o_ref.dtype)


def _gemm_mk_kernel(x_ref, w_ref, b_ref, o_ref, acc_ref, *, relu):
    k = pl.program_id(2)

    @pl.when(k == 0)
    def _():
        acc_ref[...] = jnp.zeros_like(acc_ref)

    acc_ref[...] += jnp.dot(x_ref[...], w_ref[...],
                            preferred_element_type=jnp.float32)

    @pl.when(k == pl.num_programs(2) - 1)
    def _():
        out = acc_ref[...] + b_ref[...]
        if relu:
            out = jnp.maximum(out, 0.0)
        o_ref[...] = out.astype(o_ref.dtype)


def _gemm_mk_res_kernel(x_ref, w_ref, b_ref, r_ref, o_ref, acc_ref):
    k = pl.program_id(2)

    @pl.when(k == 0)
    def _():
        acc_ref[...] = jnp.zeros_like(acc_ref)

    acc_ref[...] += jnp.dot(x_ref[...], w_ref[...],
                            preferred_element_type=jnp.float32)

    @pl.when(k == pl.num_programs(2) - 1)
    def _():
        out = acc_ref[...] + b_ref[...] + r_ref[...].astype(jnp.float32)
        o_ref[...] = jnp.maximum(out, 0.0).astype(o_ref.dtype)


@functools.lru_cache(maxsize=None)
def _gemm_callable(Mp, Kp, Np, tm, tn, tk, relu, residual, out_dtype):
    nm, nn, nk = Mp // tm, Np // tn, Kp // tk
    out_dt = jnp.dtype(out_dtype)

    if nk == 1:
        kernel = (_gemm_k1_res_kernel if residual
                  else functools.partial(_gemm_k1_kernel, relu=relu))
        grid = (nm, nn)
        in_specs = [
            pl.BlockSpec((tm, tk), lambda i, j: (i, 0)),
            pl.BlockSpec((tk, tn), lambda i, j: (0, j)),
            pl.BlockSpec((1, tn), lambda i, j: (0, j)),
        ]
        if residual:
            in_specs.append(pl.BlockSpec((tm, tn), lambda i, j: (i, j)))
        out_specs = pl.BlockSpec((tm, tn), lambda i, j: (i, j))
        scratch = []
        dims = ("parallel", "parallel")
    else:
        kernel = (_gemm_mk_res_kernel if residual
                  else functools.partial(_gemm_mk_kernel, relu=relu))
        grid = (nm, nn, nk)
        in_specs = [
            pl.BlockSpec((tm, tk), lambda i, j, k: (i, k)),
            pl.BlockSpec((tk, tn), lambda i, j, k: (k, j)),
            pl.BlockSpec((1, tn), lambda i, j, k: (0, j)),
        ]
        if residual:
            in_specs.append(pl.BlockSpec((tm, tn), lambda i, j, k: (i, j)))
        out_specs = pl.BlockSpec((tm, tn), lambda i, j, k: (i, j))
        scratch = [pltpu.VMEM((tm, tn), jnp.float32)]
        dims = ("parallel", "parallel", "arbitrary")

    fn = pl.pallas_call(
        kernel,
        out_shape=jax.ShapeDtypeStruct((Mp, Np), out_dt),
        grid_spec=pltpu.PrefetchScalarGridSpec(
            num_scalar_prefetch=0,
            grid=grid,
            in_specs=in_specs,
            out_specs=out_specs,
            scratch_shapes=scratch,
        ),
        compiler_params=pltpu.CompilerParams(
            dimension_semantics=dims,
            vmem_limit_bytes=32 * 1024 * 1024),
    )
    return jax.jit(fn)


def gemm(x, layer, *, relu=False, residual=None, out_dtype="bfloat16"):
    """x: (M, K). layer holds prepadded bf16 weight (Kp, Np) + f32 bias (1, Np)."""
    M, K = x.shape
    Kp, Np, tk, tn, N = layer["Kp"], layer["Np"], layer["tk"], layer["tn"], layer["N"]
    Mp = _rup(M, 8)

    xb = x.astype(jnp.bfloat16)
    if Mp != M or Kp != K:
        xb = jnp.pad(xb, ((0, Mp - M), (0, Kp - K)))

    args = [xb, layer["w"], layer["b"]]
    if residual is not None:
        r = residual.astype(jnp.bfloat16)
        if Mp != M or Np != r.shape[1]:
            r = jnp.pad(r, ((0, Mp - M), (0, Np - r.shape[1])))
        args.append(r)

    fn = _gemm_callable(Mp, Kp, Np, Mp, tn, tk, bool(relu),
                        residual is not None, out_dtype)
    out = fn(*args)
    if Mp != M or Np != N:
        out = out[:M, :N]
    return out


# ----------------------------------------------------------------------------
# Conv / pooling glue (NHWC)
# ----------------------------------------------------------------------------
def conv_gemm(x, layer, *, stride, pad, relu, residual=None,
              out_dtype="bfloat16"):
    """x: (N, H, W, Cin) NHWC. Residual (if any) fused into the GEMM epilogue."""
    N, H, W, C = x.shape
    kh, kw = layer["kh"], layer["kw"]
    Cout = layer["N"]

    if kh == 1 and kw == 1 and pad == 0:
        xs = x[:, ::stride, ::stride, :] if stride > 1 else x
        Ho, Wo = xs.shape[1], xs.shape[2]
        cols = xs.reshape(N * Ho * Wo, C)
    else:
        Ho = (H + 2 * pad - kh) // stride + 1
        Wo = (W + 2 * pad - kw) // stride + 1
        xp = jnp.pad(x, ((0, 0), (pad, pad), (pad, pad), (0, 0)))
        patches = [
            xp[:, i:i + stride * (Ho - 1) + 1:stride,
               j:j + stride * (Wo - 1) + 1:stride, :]
            for i in range(kh) for j in range(kw)
        ]
        cols = jnp.concatenate(patches, axis=-1).reshape(N * Ho * Wo, kh * kw * C)

    r2d = None if residual is None else residual.reshape(N * Ho * Wo, Cout)
    out = gemm(cols, layer, relu=relu, residual=r2d, out_dtype=out_dtype)
    return out.reshape(N, Ho, Wo, Cout)


def maxpool2d_3x3_s2_p1(x):
    N, H, W, C = x.shape
    neg = float(jnp.finfo(x.dtype).min)
    xp = jnp.pad(x, ((0, 0), (1, 1), (1, 1), (0, 0)), constant_values=neg)
    Ho = (H + 2 - 3) // 2 + 1
    Wo = (W + 2 - 3) // 2 + 1
    out = None
    for i in range(3):
        for j in range(3):
            p = xp[:, i:i + 2 * (Ho - 1) + 1:2, j:j + 2 * (Wo - 1) + 1:2, :]
            out = p if out is None else jnp.maximum(out, p)
    return out


def adaptive_avg_pool2d(x, oh, ow):
    _, H, W, _ = x.shape
    rows = []
    for i in range(oh):
        h0 = (i * H) // oh
        h1 = -((-(i + 1) * H) // oh)
        cols = []
        for j in range(ow):
            w0 = (j * W) // ow
            w1 = -((-(j + 1) * W) // ow)
            cols.append(jnp.mean(x[:, h0:h1, w0:w1, :], axis=(1, 2)))
        rows.append(jnp.stack(cols, axis=1))          # (N, ow, C)
    return jnp.stack(rows, axis=1)                    # (N, oh, ow, C)


# ----------------------------------------------------------------------------
# Deterministic parameter init + one-time GEMM preparation (pad + bf16)
# ----------------------------------------------------------------------------
class ParamGen:
    def __init__(self, seed=0):
        self.key = jax.random.PRNGKey(seed)

    def normal(self, shape, fan_in):
        self.key, sub = jax.random.split(self.key)
        return (jax.random.normal(sub, shape, dtype=jnp.float32)
                / math.sqrt(float(fan_in)))


def _prep_gemm(w_kn, bias):
    """(K, N) f32 weight + (N,) f32 bias -> padded bf16/f32 + tile choice."""
    K, N = w_kn.shape
    Np = _rup(N, 128)
    if Np <= 512:
        tn = Np
    else:
        tn = 512
        Np = _rup(N, 512)
    if K <= 4096:
        tk, Kp = K, K                 # full-K single block: no padding, no K grid
    else:
        nblk = -(-K // 4096)
        tk = _rup(-(-K // nblk), 128)
        Kp = tk * nblk
    w_pad = jnp.pad(w_kn, ((0, Kp - K), (0, Np - N))).astype(jnp.bfloat16)
    b_pad = jnp.pad(bias, (0, Np - N)).reshape(1, Np).astype(jnp.float32)
    return {"w": w_pad, "b": b_pad, "K": K, "N": N,
            "Kp": Kp, "Np": Np, "tk": tk, "tn": tn, "kh": 1, "kw": 1}


def _prep_conv(w_oihw, bias):
    Cout, Cin, kh, kw = w_oihw.shape
    # patch feature order is (kh, kw, Cin) -> weight must be (kh, kw, Cin, Cout)
    w_kn = w_oihw.transpose(2, 3, 1, 0).reshape(kh * kw * Cin, Cout)
    layer = _prep_gemm(w_kn, bias)
    layer["kh"], layer["kw"] = kh, kw
    return layer


def _prep_linear(w_oi, bias):
    return _prep_gemm(w_oi.T, bias)


_BN_EPS = 1e-5
RESNET152_CFG = [(64, 3, 1), (128, 8, 2), (256, 36, 2), (512, 3, 2)]


def _conv_bn(gen, cin, cout, k):
    """Conv(bias=False) + eval-mode BN(gamma=1,beta=0,mean=0,var=1), folded."""
    w = gen.normal((cout, cin, k, k), cin * k * k)
    scale = 1.0 / math.sqrt(1.0 + _BN_EPS)
    return _prep_conv(w * scale, jnp.zeros((cout,), jnp.float32))


def _conv_bias(gen, cin, cout, k):
    w = gen.normal((cout, cin, k, k), cin * k * k)
    b = gen.normal((cout,), cin * k * k)
    return _prep_conv(w, b)


def _lin(gen, fin, fout):
    return _prep_linear(gen.normal((fout, fin), fin), gen.normal((fout,), fin))


def build_resnet152(gen):
    params = {"conv1": _conv_bn(gen, 3, 64, 7), "layers": []}
    inplanes = 64
    for planes, nblocks, stride in RESNET152_CFG:
        blocks = []
        for bi in range(nblocks):
            s = stride if bi == 0 else 1
            blk = {
                "conv1": _conv_bn(gen, inplanes, planes, 1),
                "conv2": _conv_bn(gen, planes, planes, 3),
                "conv3": _conv_bn(gen, planes, planes * 4, 1),
                "ds": (_conv_bn(gen, inplanes, planes * 4, 1)
                       if (bi == 0 and (s != 1 or inplanes != planes * 4))
                       else None),
            }
            blocks.append(blk)
            inplanes = planes * 4
        params["layers"].append(blocks)
    return params


def build_params(seed=0):
    gen = ParamGen(seed)
    return {
        "resnet": build_resnet152(gen),
        "m1_fc1": _lin(gen, 2048, 512),
        "m1_fc2": _lin(gen, 512, 4),
        "m2": {
            "c1": _conv_bias(gen, 3, 64, 3),
            "c2": _conv_bias(gen, 64, 64, 3),
            "c3": _conv_bias(gen, 64, 128, 5),
            "c4": _conv_bias(gen, 128, 128, 3),
            "c5": _conv_bias(gen, 128, 256, 5),
            "fc1": _lin(gen, 12544, 2000),
            "fc2": _lin(gen, 2000, 100),
            "fc3": _lin(gen, 100, 4),
        },
        "m3": _lin(gen, 8, 4),
    }


# ----------------------------------------------------------------------------
# Forward pass (NHWC activations, bf16 between layers, f32 logits)
# ----------------------------------------------------------------------------
def bottleneck(x, blk, stride):
    out = conv_gemm(x, blk["conv1"], stride=1, pad=0, relu=True)       # 1x1
    out = conv_gemm(out, blk["conv2"], stride=stride, pad=1, relu=True)  # 3x3
    if blk["ds"] is not None:
        identity = conv_gemm(x, blk["ds"], stride=stride, pad=0, relu=False)
    else:
        identity = x
    # conv3 + BN + residual add + ReLU fused into a single GEMM epilogue
    return conv_gemm(out, blk["conv3"], stride=1, pad=0, relu=True,
                     residual=identity)


def resnet_backbone(x, p):
    x = conv_gemm(x, p["conv1"], stride=2, pad=3, relu=True)
    x = maxpool2d_3x3_s2_p1(x)
    for li, (_, nblocks, stride) in enumerate(RESNET152_CFG):
        for bi in range(nblocks):
            s = stride if bi == 0 else 1
            x = bottleneck(x, p["layers"][li][bi], s)
    return jnp.mean(x.astype(jnp.float32), axis=(1, 2))   # AdaptiveAvgPool(1,1)+Flatten


def model1_forward(x, params):
    feat = resnet_backbone(x, params["resnet"])            # (N, 2048)
    h = gemm(feat, params["m1_fc1"], relu=True)
    return gemm(h, params["m1_fc2"], relu=False, out_dtype="float32")  # (N, 4)


def model2_forward(x, p):
    x = conv_gemm(x, p["c1"], stride=1, pad=1, relu=True)
    x = conv_gemm(x, p["c2"], stride=1, pad=1, relu=True)   # Dropout = identity (eval)
    x = conv_gemm(x, p["c3"], stride=2, pad=1, relu=True)   # Dropout = identity (eval)
    x = conv_gemm(x, p["c4"], stride=1, pad=1, relu=True)   # Dropout = identity (eval)
    x = conv_gemm(x, p["c5"], stride=2, pad=1, relu=True)
    x = adaptive_avg_pool2d(x, 7, 7)                        # (N, 7, 7, 256)
    n = x.shape[0]
    x = x.transpose(0, 3, 1, 2).reshape(n, -1)              # PyTorch NCHW flatten order
    x = gemm(x, p["fc1"], relu=True)
    x = gemm(x, p["fc2"], relu=True)
    return gemm(x, p["fc3"], relu=False, out_dtype="float32")  # (N, 4)


def self_define_model_forward(x_nchw, params):
    x = jnp.transpose(x_nchw, (0, 2, 3, 1))                 # NCHW -> NHWC once
    x1 = model1_forward(x, params)
    x2 = model2_forward(x, params["m2"])
    cat = jnp.concatenate([x1, x2], axis=1)                 # (N, 8)
    return gemm(cat, params["m3"], relu=False, out_dtype="float32")  # (N, 4)


# ----------------------------------------------------------------------------
if __name__ == "__main__":
    key = jax.random.PRNGKey(0)
    x = jax.random.normal(jax.random.fold_in(key, 1), (2, 3, 16, 16),
                          dtype=jnp.float32)
    params = build_params(seed=0)
    out = self_define_model_forward(x, params)
    out = jax.block_until_ready(out)
    assert out.shape == (2, 4) and out.dtype == jnp.float32
    assert bool(jnp.all(jnp.isfinite(out)))
    print("KERNEL_OK")
</pallas_src>

<mosaic_0001>
module attributes {stable_mosaic.version = 11 : i64} {
  func.func @_gemm_k1_kernel(%arg0: i32, %arg1: i32, %arg2: memref<128x147xbf16, #tpu.memory_space<vmem>>, %arg3: memref<147x128xbf16, #tpu.memory_space<vmem>>, %arg4: memref<1x128xf32, #tpu.memory_space<vmem>>, %arg5: memref<128x128xbf16, #tpu.memory_space<vmem>>) attributes {dimension_semantics = [#tpu.dimension_semantics<parallel>, #tpu.dimension_semantics<parallel>], iteration_bounds = array<i64: 1, 1>, scalar_prefetch = 0 : i64, scratch_operands = 0 : i64, tpu.core_type = #tpu.core_type<tc>, window_params = [{transform_indices = @transform_0, window_bounds = array<i64: 128, 147>}, {transform_indices = @transform_1, window_bounds = array<i64: 147, 128>}, {transform_indices = @transform_2, window_bounds = array<i64: 1, 128>}, {transform_indices = @transform_3, window_bounds = array<i64: 128, 128>}]} {
    %c0 = arith.constant 0 : index
    %c0_0 = arith.constant 0 : index
    %0 = vector.load %arg2[%c0, %c0_0] : memref<128x147xbf16, #tpu.memory_space<vmem>>, vector<128x147xbf16>
    %c0_1 = arith.constant 0 : index
    %c0_2 = arith.constant 0 : index
    %1 = vector.load %arg3[%c0_1, %c0_2] : memref<147x128xbf16, #tpu.memory_space<vmem>>, vector<147x128xbf16>
    %cst = arith.constant dense<0.000000e+00> : vector<128x128xf32>
    %2 = tpu.matmul %0, %1, %cst {dimension_numbers = #tpu.dot_dimension_numbers<[1], [0], [0], [1], [0, 0, 1, 1], [], []>} : vector<128x147xbf16>, vector<147x128xbf16>, vector<128x128xf32> -> vector<128x128xf32>
    %c0_3 = arith.constant 0 : index
    %c0_4 = arith.constant 0 : index
    %3 = vector.load %arg4[%c0_3, %c0_4] : memref<1x128xf32, #tpu.memory_space<vmem>>, vector<1x128xf32>
    %4 = vector.broadcast %3 : vector<1x128xf32> to vector<128x128xf32>
    %5 = arith.addf %2, %4 : vector<128x128xf32>
    %cst_5 = arith.constant 0.000000e+00 : f32
    %6 = vector.broadcast %cst_5 : f32 to vector<128x128xf32>
    %7 = arith.maximumf %5, %6 : vector<128x128xf32>
    %8 = arith.truncf %7 : vector<128x128xf32> to vector<128x128xbf16>
    %c0_6 = arith.constant 0 : index
    %c0_7 = arith.constant 0 : index
    %9 = vector.load %arg5[%c0_6, %c0_7] : memref<128x128xbf16, #tpu.memory_space<vmem>>, vector<128x128xbf16>
    tpu.vector_store %arg5[%c0_6, %c0_7], %8 {strides = array<i32>} : memref<128x128xbf16, #tpu.memory_space<vmem>>, vector<128x128xbf16>,
    return
  }
  func.func @transform_0(%arg0: i32, %arg1: i32) -> (i32, i32) {
    %c0_i32 = arith.constant 0 : i32
    %c0_i32_0 = arith.constant 0 : i32
    return %arg0, %c0_i32 : i32, i32
  }
  func.func @transform_1(%arg0: i32, %arg1: i32) -> (i32, i32) {
    %c0_i32 = arith.constant 0 : i32
    %c0_i32_0 = arith.constant 0 : i32
    return %c0_i32, %arg1 : i32, i32
  }
  func.func @transform_2(%arg0: i32, %arg1: i32) -> (i32, i32) {
    %c0_i32 = arith.constant 0 : i32
    %c0_i32_0 = arith.constant 0 : i32
    return %c0_i32, %arg1 : i32, i32
  }
  func.func @transform_3(%arg0: i32, %arg1: i32) -> (i32, i32) {
    %c0_i32 = arith.constant 0 : i32
    return %arg0, %arg1 : i32, i32
  }
}

</mosaic_0001>

<bundles_post_ra>
// kernel: tpu_custom_call.1
= control target key start
LH: loop header
LB: loop body
LE: loop exit
PB: predicated region body
PF: predicated region fallthrough
CT: control target
= control target key end

     0   :  { %v625_v1 = vmov 0   ;;  %vm187_vm0 = vcmask 154624   ;;  %s769_s0 = inlined_call_operand.vmem [shape: bf16[128,147], index: 0, kind: input, shape index: {}]   ;;  %s770_s1 = inlined_call_operand.vmem [shape: bf16[147,128], index: 1, kind: input, shape index: {}]   ;;  %s771_s2 = inlined_call_operand.vmem [shape: f32[1,128], index: 2, kind: input, shape index: {}]   ;;  %s772_s3 = inlined_call_operand.hbm [shape: bf16[128,128], index: 3, kind: output, shape index: {}]  }
   0x1   :  { %v567_v0 = vld [vmem:[%s770_s1] sm:$0xff]   ;;  %219 = vmatprep.subr.bf16.mxu0 %v625_v1  ;;  %542 = vmatprep.subr.bf16.mxu1 %v625_v1  ;;  %v568_v2 = vld [vmem:[%s770_s1 + $0x8] sm:$0xff]   ;;  %v569_v3 = vld [vmem:[%s770_s1 + $0x10] sm:$0xff]  }
   0x2   :  { %220 = vmatpush1.bf16.msra.mxu0 %v567_v0  ;;  %552 = vmatpush1.bf16.msra.mxu1 %v567_v0  ;;  %v570_v4 = vld [vmem:[%s770_s1 + $0x18] sm:$0xff]   ;;  %v579_v5 = vld [vmem:[%s769_s0 + $0x4] ss:$8 sps:$4 sm:$0xff]  }
   0x3   :  { %221 = vmatprep.subr.bf16.mxu0 %v625_v1  ;;  %543 = vmatprep.subr.bf16.mxu1 %v625_v1  ;;  %v582_v6 = vld [vmem:[%s769_s0 + $0x44] ss:$8 sps:$4 sm:$0xff]  }
   0x4   :  { %455 = vmatprep.mubr.msk.bf16.mxu0 %vm187_vm0, %v579_v5  ;;  %v571_v7 = vld [vmem:[%s770_s1 + $0x20] sm:$0xff]   ;;  %459 = vmatprep.mubr.msk.bf16.mxu1 %vm187_vm0, %v582_v6  ;;  %v572_v8 = vld [vmem:[%s770_s1 + $0x28] sm:$0xff]  }
   0x6   :  { %222 = vmatpush1.bf16.msra.mxu0 %v568_v2  ;;  %553 = vmatpush1.bf16.msra.mxu1 %v568_v2 }
   0x7   :  { %223 = vmatprep.subr.bf16.mxu0 %v625_v1  ;;  %544 = vmatprep.subr.bf16.mxu1 %v625_v1 }
   0xa   :  { %224 = vmatpush1.bf16.msra.mxu0 %v569_v3  ;;  %554 = vmatpush1.bf16.msra.mxu1 %v569_v3 }
   0xb   :  { %225 = vmatprep.subr.bf16.mxu0 %v625_v1  ;;  %545 = vmatprep.subr.bf16.mxu1 %v625_v1 }
   0xe   :  { %226 = vmatpush1.bf16.msra.mxu0 %v570_v4  ;;  %555 = vmatpush1.bf16.msra.mxu1 %v570_v4 }
   0xf   :  { %227 = vmatprep.subr.bf16.mxu0 %v625_v1  ;;  %546 = vmatprep.subr.bf16.mxu1 %v625_v1 }
  0x12   :  { %228 = vmatpush1.bf16.msra.mxu0 %v571_v7  ;;  %556 = vmatpush1.bf16.msra.mxu1 %v571_v7 }
  0x13   :  { %229 = vmatprep.subr.bf16.mxu0 %v625_v1  ;;  %547 = vmatprep.subr.bf16.mxu1 %v625_v1 }
  0x14   :  { %8 = vsyncpa [#allocation3], 0  ;;  %v573_v9 = vld [vmem:[%s770_s1 + $0x30] sm:$0xff]   ;;  %vm212_vm1 = vcmask 1040384   ;;  %v574_v10 = vld [vmem:[%s770_s1 + $0x38] sm:$0xff]   ;;  %vm213_vm2 = vcmask 1041408  }
  0x15   :  { %v626_v11 = vmov 65535   ;;  %v575_v13 = vld [vmem:[%s770_s1 + $0x40] sm:$0xff]   ;;  %v576_v14 = vld [vmem:[%s770_s1 + $0x48] ss:$0 sps:$4 sm:$0x33]  }
  0x16   :  { %230 = vmatpush1.bf16.msra.mxu0 %v572_v8  ;;  %557 = vmatpush1.bf16.msra.mxu1 %v572_v8  ;;  %v214_v12 = vsel %vm212_vm1, 4294967295, %v626_v11  ;;  %v577_v17 = vld [vmem:[%s769_s0] ss:$8 sps:$4 sm:$0xff]   ;;  %v583_v19 = vld [vmem:[%s769_s0 + $0x14] ss:$8 sps:$4 sm:$0xff]  }
  0x17   :  { %231 = vmatprep.subr.bf16.mxu0 %v625_v1  ;;  %548 = vmatprep.subr.bf16.mxu1 %v625_v1  ;;  %v215_v15 = vsel %vm213_vm2, %v214_v12, 0  ;;  %v580_v18 = vld [vmem:[%s769_s0 + $0x40] ss:$8 sps:$4 sm:$0xff]   ;;  %v585_v20 = vld [vmem:[%s769_s0 + $0x54] ss:$8 sps:$4 sm:$0xff]  }
  0x18   :  { %v217_v16 = vand.u32 %v576_v14, %v215_v15  ;;  %v587_v21 = vld [vmem:[%s769_s0 + $0x10] ss:$8 sps:$4 sm:$0xff]   ;;  %v589_v23 = vld [vmem:[%s769_s0 + $0x24] ss:$8 sps:$4 sm:$0xff]   ;;  %v593_v25 = vld [vmem:[%s769_s0 + $0x20] ss:$8 sps:$4 sm:$0xff]  }
  0x19   :  { %v588_v22 = vld [vmem:[%s769_s0 + $0x50] ss:$8 sps:$4 sm:$0xff]   ;;  %v591_v24 = vld [vmem:[%s769_s0 + $0x64] ss:$8 sps:$4 sm:$0xff]   ;;  %v594_v26 = vld [vmem:[%s769_s0 + $0x60] ss:$8 sps:$4 sm:$0xff]  }
  0x1a   :  { %232 = vmatpush1.bf16.msra.mxu0 %v573_v9  ;;  %558 = vmatpush1.bf16.msra.mxu1 %v573_v9  ;;  %v595_v27 = vld [vmem:[%s769_s0 + $0x34] ss:$8 sps:$4 sm:$0xff]   ;;  %v599_v29 = vld [vmem:[%s769_s0 + $0x30] ss:$8 sps:$4 sm:$0xff]   ;;  %v739_v31 = vld [vmem:[%s771_s2] ss:$0 sm:$0xff] }
  0x1b   :  { %233 = vmatprep.subr.bf16.mxu0 %v625_v1  ;;  %549 = vmatprep.subr.bf16.mxu1 %v625_v1  ;;  %v597_v28 = vld [vmem:[%s769_s0 + $0x74] ss:$8 sps:$4 sm:$0xff]   ;;  %v600_v30 = vld [vmem:[%s769_s0 + $0x70] ss:$8 sps:$4 sm:$0xff]   ;;  %s627_s0 = smov [#allocation2]  }
  0x1c   :  { %s417_s2 = sshll.u32 %s627_s0, 4  ;;  %s418_s2 = int_to_ptr.vmem [resolvable:$true] %s417_s2 }
  0x1d   :  { %s601_s11 = scalar_lea.vmem %s418_s2, 1024  ;;  %p606_p1 = scmp.lt.s32.totalorder %s418_s2, %s418_s2 }
  0x1e   :  { %234 = vmatpush1.bf16.msra.mxu0 %v574_v10  ;;  %559 = vmatpush1.bf16.msra.mxu1 %v574_v10  ;;  %p602_p0 = scmp.ne.s32.totalorder %s418_s2, %s601_s11  ;;  %p607_p2 = scmp.lt.s32.totalorder %s601_s11, %s601_s11 }
  0x1f   :  { %235 = vmatprep.subr.bf16.mxu0 %v625_v1  ;;  %550 = vmatprep.subr.bf16.mxu1 %v625_v1 }
  0x20   :  { %p608_p3 = por %p607_p2, %p606_p1 }
  0x22   :  { %236 = vmatpush1.bf16.msra.mxu0 %v575_v13  ;;  %560 = vmatpush1.bf16.msra.mxu1 %v575_v13  ;;  %p609_p4 = pnand %p608_p3, %p602_p0 }
  0x23   :  { %237 = vmatprep.subr.bf16.mxu0 %v625_v1  ;;  %551 = vmatprep.subr.bf16.mxu1 %v625_v1 }
  0x26   :  { %238 = vmatpush1.bf16.msra.mxu0 %v217_v16  ;;  %561 = vmatpush1.bf16.msra.mxu1 %v217_v16 }
  0x29   :  { %252 = vmatmul.mubr.bf16.vlgmr.msra.gmra.mrb[0].mxu0 %v577_v17  ;;  %284 = vmatmul.mubr.bf16.vlgmr.msra.gmra.mrb[0].mxu1 %v580_v18 }
  0x2a   :  { %456 = vmatprep.mubr.msk.bf16.mxu0 %vm187_vm0, %v583_v19  ;;  %460 = vmatprep.mubr.msk.bf16.mxu1 %vm187_vm0, %v585_v20 }
  0x31   :  { %260 = vmatmul.mubr.bf16.gmra.mrb[4].mxu0 %v587_v21  ;;  %292 = vmatmul.mubr.bf16.gmra.mrb[4].mxu1 %v588_v22 }
  0x32   :  { %457 = vmatprep.mubr.msk.bf16.mxu0 %vm187_vm0, %v589_v23  ;;  %461 = vmatprep.mubr.msk.bf16.mxu1 %vm187_vm0, %v591_v24 }
  0x39   :  { %268 = vmatmul.mubr.bf16.gmra.mrb[8].mxu0 %v593_v25  ;;  %300 = vmatmul.mubr.bf16.gmra.mrb[8].mxu1 %v594_v26 }
  0x3a   :  { %458 = vmatprep.mubr.msk.bf16.mxu0 %vm187_vm0, %v595_v27  ;;  %462 = vmatprep.mubr.msk.bf16.mxu1 %vm187_vm0, %v597_v28 }
  0x41   :  { %276 = vmatmul.mubr.bf16.gmra.mrb[12].mxu0 %v599_v29  ;;  %308 = vmatmul.mubr.bf16.gmra.mrb[12].mxu1 %v600_v30 }
  0xfc   :  { %v253_v32 = vpop.f32.mrb[0].mxu0  ;;  %v285_v33 = vpop.f32.mrb[0].mxu1 }
  0xfd   :  { %v254_v34 = vadd.f32 %v739_v31, %v253_v32  ;;  %v286_v35 = vadd.f32 %v739_v31, %v285_v33  ;;  %v255_v36 = vpop.f32.mrb[1].mxu0  ;;  %v287_v37 = vpop.f32.mrb[1].mxu1 }
  0xfe   :  { %v256_v38 = vpop.f32.mrb[2].mxu0  ;;  %v288_v39 = vpop.f32.mrb[2].mxu1 }
  0xff   :  { %v257_v40 = vadd.f32 %v739_v31, %v256_v38  ;;  %v289_v41 = vadd.f32 %v739_v31, %v288_v39  ;;  %v258_v42 = vpop.f32.mrb[3].mxu0  ;;  %v290_v43 = vpop.f32.mrb[3].mxu1  ;;  %v316_v44 = vmax.f32 %v254_v34, 0.0  ;;  %v324_v45 = vmax.f32 %v286_v35, 0.0 }
 0x101   :  { %v317_v46 = vmax.f32 %v257_v40, 0.0  ;;  %v325_v47 = vmax.f32 %v289_v41, 0.0 }
 0x103   :  { %v498_v48 = vpack.c.bf16 %v317_v46, %v316_v44  ;;  %v518_v49 = vpack.c.bf16 %v325_v47, %v324_v45 }
 0x104   :  { %v261_v50 = vpop.f32.mrb[4].mxu0  ;;  %v293_v51 = vpop.f32.mrb[4].mxu1 }
 0x105   :  { %499 = vst [vmem:[#allocation2] sm:$0xff] %v498_v48   ;;  %538 = vst [vmem:[#allocation2 + $0x20] sm:$0xff] %v518_v49   ;;  %v262_v52 = vadd.f32 %v739_v31, %v261_v50  ;;  %v294_v53 = vadd.f32 %v739_v31, %v293_v51  ;;  %v263_v54 = vpop.f32.mrb[5].mxu0  ;;  %v295_v55 = vpop.f32.mrb[5].mxu1 }
 0x106   :  { %v264_v56 = vpop.f32.mrb[6].mxu0  ;;  %v296_v57 = vpop.f32.mrb[6].mxu1 }
 0x107   :  { %v265_v58 = vadd.f32 %v739_v31, %v264_v56  ;;  %v297_v59 = vadd.f32 %v739_v31, %v296_v57  ;;  %v266_v60 = vpop.f32.mrb[7].mxu0  ;;  %v298_v61 = vpop.f32.mrb[7].mxu1  ;;  %v318_v62 = vmax.f32 %v262_v52, 0.0  ;;  %v326_v63 = vmax.f32 %v294_v53, 0.0 }
 0x109   :  { %v319_v0 = vmax.f32 %v265_v58, 0.0  ;;  %v327_v1 = vmax.f32 %v297_v59, 0.0 }
 0x10b   :  { %v503_v2 = vpack.c.bf16 %v319_v0, %v318_v62  ;;  %v523_v3 = vpack.c.bf16 %v327_v1, %v326_v63 }
 0x10c   :  { %v269_v4 = vpop.f32.mrb[8].mxu0  ;;  %v301_v5 = vpop.f32.mrb[8].mxu1 }
 0x10d   :  { %535 = vst [vmem:[#allocation2 + $0x8] sm:$0xff] %v503_v2   ;;  %539 = vst [vmem:[#allocation2 + $0x28] sm:$0xff] %v523_v3   ;;  %v270_v6 = vadd.f32 %v739_v31, %v269_v4  ;;  %v302_v7 = vadd.f32 %v739_v31, %v301_v5  ;;  %v271_v8 = vpop.f32.mrb[9].mxu0  ;;  %v303_v9 = vpop.f32.mrb[9].mxu1 }
 0x10e   :  { %v272_v10 = vpop.f32.mrb[10].mxu0  ;;  %v304_v11 = vpop.f32.mrb[10].mxu1 }
 0x10f   :  { %v273_v12 = vadd.f32 %v739_v31, %v272_v10  ;;  %v305_v13 = vadd.f32 %v739_v31, %v304_v11  ;;  %v274_v14 = vpop.f32.mrb[11].mxu0  ;;  %v306_v15 = vpop.f32.mrb[11].mxu1  ;;  %v320_v16 = vmax.f32 %v270_v6, 0.0  ;;  %v328_v17 = vmax.f32 %v302_v7, 0.0 }
 0x111   :  { %v321_v18 = vmax.f32 %v273_v12, 0.0  ;;  %v329_v19 = vmax.f32 %v305_v13, 0.0 }
 0x113   :  { %v508_v20 = vpack.c.bf16 %v321_v18, %v320_v16  ;;  %v528_v21 = vpack.c.bf16 %v329_v19, %v328_v17 }
 0x114   :  { %v277_v22 = vpop.f32.mrb[12].mxu0  ;;  %v309_v23 = vpop.f32.mrb[12].mxu1 }
 0x115   :  { %536 = vst [vmem:[#allocation2 + $0x10] sm:$0xff] %v508_v20   ;;  %540 = vst [vmem:[#allocation2 + $0x30] sm:$0xff] %v528_v21   ;;  %v278_v24 = vadd.f32 %v739_v31, %v277_v22  ;;  %v310_v25 = vadd.f32 %v739_v31, %v309_v23  ;;  %v279_v26 = vpop.f32.mrb[13].mxu0  ;;  %v311_v27 = vpop.f32.mrb[13].mxu1 }
 0x116   :  { %v280_v28 = vpop.f32.mrb[14].mxu0  ;;  %v312_v29 = vpop.f32.mrb[14].mxu1 }
 0x117   :  { %v281_v30 = vadd.f32 %v739_v31, %v280_v28  ;;  %v313_v32 = vadd.f32 %v739_v31, %v312_v29  ;;  %v282_v33 = vpop.f32.mrb[15].mxu0  ;;  %v314_v34 = vpop.f32.mrb[15].mxu1  ;;  %v322_v35 = vmax.f32 %v278_v24, 0.0  ;;  %v330_v36 = vmax.f32 %v310_v25, 0.0 }
 0x119   :  { %v323_v37 = vmax.f32 %v281_v30, 0.0  ;;  %v331_v38 = vmax.f32 %v313_v32, 0.0 }
 0x11b   :  { %v513_v39 = vpack.c.bf16 %v323_v37, %v322_v35  ;;  %v533_v40 = vpack.c.bf16 %v331_v38, %v330_v36 }
 0x11d   :  { %537 = vst [vmem:[#allocation2 + $0x18] sm:$0xff] %v513_v39   ;;  %541 = vst [vmem:[#allocation2 + $0x38] sm:$0xff] %v533_v40  }
 0x11e   :  { %612 = shalt.err (!%p609_p4)
}
 0x11f   :  { %s613_s1 = scalar_lea.hbm %s772_s3, 1024 }
 0x120   :  { %p614_p5 = scmp.ne.s32.totalorder %s772_s3, %s613_s1  ;;  %p617_p6 = scmp.lt.u32.totalorder %s613_s1, %s772_s3 }
 0x122   :  { %p619_p7 = pnand %p617_p6, %p614_p5 }
 0x124   :  { %622 = shalt.err (!%p619_p7)
}
 0x125   :  { %s628_s18 = smov 64   ;;  %s629_s19 = smov 4  }
 0x126   :  { %423 = dma.vmem_to_hbm [thread:$0]  %s418_s2, 1024, %s772_s3, [#allocation3], %s628_s18, %s628_s18, %s629_s19  }
 0x127   :  { %623 = dma.done.wait [#allocation3], 1024  }
 0x128   :  { %624 = vsyncadd [#allocation3], 4294966272 }
 0x129   :  { %427 = vsyncpa [#allocation3], 1 }

</bundles_post_ra>
